<compile_context>
chip_gen: v7x
topology: tpu7x:2x2x1
jax: 0.10.0
libtpu: 0.0.40
codegen_flags: <defaults>
</compile_context>

<pallas_src>
import jax
import jax.numpy as jnp
from jax import lax
from jax.experimental import pallas as pl
from jax.experimental.pallas import tpu as pltpu


def _make_dualdense_kernel(cin, cout, h, w, kh, kw, b_imgs):
    hw = h * w
    pad_h = kh // 2
    pad_w = kw // 2
    w_is_pow2 = (w & (w - 1)) == 0
    rows_in = b_imgs * cin

    def kernel(x_ref, w_ref, ident_ref, out_ref):
        # x_ref:     (B*Cin,  H*W)        -- flattened NCHW activations for B images
        # w_ref:     (Cout,   KH*KW*Cin)  -- flattened conv weights (tiny, resident)
        # ident_ref: (B*Cout, H*W)        -- Identity-dual operand (x2), flattened NCHW
        # out_ref:   (B*Cout, H*W)
        x = x_ref[...]                                            # (B*Cin, HW) f32

        # ---- hoisted boundary predicates (computed once, shared by all taps) ----
        lane = lax.broadcasted_iota(jnp.int32, (rows_in, hw), 1)  # flattened H*W position
        if w_is_pow2:
            col = jnp.bitwise_and(lane, w - 1)                    # position within a row
        else:
            col = lane % w

        row_ok = {}
        for ikh in range(kh):
            dh = ikh - pad_h
            if dh < 0:
                row_ok[dh] = lane >= (-dh) * w                    # need h + dh >= 0
            elif dh > 0:
                row_ok[dh] = lane < (h - dh) * w                  # need h + dh <= H-1
            else:
                row_ok[dh] = None
        col_ok = {}
        for ikw in range(kw):
            dw = ikw - pad_w
            if dw < 0:
                col_ok[dw] = col >= -dw                           # need w + dw >= 0
            elif dw > 0:
                col_ok[dw] = col < w - dw                         # need w + dw <= W-1
            else:
                col_ok[dw] = None

        # ---- build the KH*KW rolled+masked taps once for the whole block ----
        taps = []
        for ikh in range(kh):
            dh = ikh - pad_h
            for ikw in range(kw):
                dw = ikw - pad_w
                delta = dh * w + dw                               # flattened source offset
                if delta == 0:
                    tap = x
                else:
                    # tap[p] = x[p + delta] (circular; wrapped lanes masked below)
                    tap = pltpu.roll(x, (-delta) % hw, 1)
                m = row_ok[dh]
                if col_ok[dw] is not None:
                    m = col_ok[dw] if m is None else jnp.logical_and(m, col_ok[dw])
                if m is not None:
                    tap = jnp.where(m, tap, 0.0)
                taps.append(tap)                                  # (B*Cin, HW)

        # ---- per-image im2col patches, lane-concatenated: (KH*KW*Cin, B*HW) ----
        patches = jnp.concatenate(
            [jnp.concatenate([t[b * cin:(b + 1) * cin, :] for t in taps], axis=0)
             for b in range(b_imgs)],
            axis=1)

        # ---- single fused MXU contraction: (Cout, KH*KW*Cin) @ (KH*KW*Cin, B*HW) ----
        res = jnp.dot(w_ref[...], patches, preferred_element_type=jnp.float32)

        # ---- epilogue: fold back to (B*Cout, HW), fuse Identity-dual add, full store ----
        res_rows = jnp.concatenate(
            [res[:, b * hw:(b + 1) * hw] for b in range(b_imgs)], axis=0)
        out_ref[...] = (res_rows + ident_ref[...]).astype(out_ref.dtype)

    return kernel


def dual_dense_forward(x0, x1, x2, conv_w, *, images_per_step=None):
    """DualDense.forward(x0, x1, x2) with duals = [DualConv2d(W), None, Identity].

    Semantics: conv2d(x0, conv_w, stride=1, padding=1, bias=None) + x2
    x0, x1, x2: NCHW float32 (x1 aligns with the `None` dual and is ignored;
    the conv bias is intentionally ignored, matching DualConv2d.forward).
    conv_w: OIHW float32.  Returns NCHW float32.
    """
    del x1  # `None` dual contributes nothing
    n, cin, h, w = x0.shape
    cout, cin2, kh, kw = conv_w.shape
    assert cin == cin2 and x2.shape == (n, cout, h, w)
    hw = h * w
    assert hw % 128 == 0, "H*W must be a multiple of 128 for lane-dense tiles"

    if images_per_step is None:
        # Tiny problem: a single fused grid step avoids per-step fixed cost.
        # (Set images_per_step = n // 2 on dual-TC v7x to shard across both cores.)
        images_per_step = n
    b_imgs = images_per_step
    assert n % b_imgs == 0, "images_per_step must divide the batch"
    if b_imgs != n:
        # Partial-row blocks must keep full (8,128) sublane tiles.
        assert (b_imgs * cin) % 8 == 0 and (b_imgs * cout) % 8 == 0, \
            "images_per_step * channels must be a multiple of 8 when blocking the batch"

    # Pure metadata reshapes (no transposes, no HBM data movement).
    x0_flat = x0.reshape(n * cin, hw)
    x2_flat = x2.reshape(n * cout, hw)
    # Tiny (Cout, KH*KW*Cin) weight matrix; row order matches the patch row order
    # (tap-major, then input channel): W_flat[o, (kh*KW+kw)*Cin + c] = conv_w[o, c, kh, kw].
    wmat = conv_w.transpose(0, 2, 3, 1).reshape(cout, kh * kw * cin)

    kernel = _make_dualdense_kernel(cin, cout, h, w, kh, kw, b_imgs)

    flops = 2 * n * hw * cout * cin * kh * kw
    bytes_accessed = 4 * (x0_flat.size + x2_flat.size + wmat.size + n * cout * hw)

    out_flat = pl.pallas_call(
        kernel,
        out_shape=jax.ShapeDtypeStruct((n * cout, hw), jnp.float32),
        grid=(n // b_imgs,),
        in_specs=[
            pl.BlockSpec((b_imgs * cin, hw), lambda i: (i, 0)),        # activations (B images)
            pl.BlockSpec((cout, kh * kw * cin), lambda i: (0, 0)),     # resident flat weights
            pl.BlockSpec((b_imgs * cout, hw), lambda i: (i, 0)),       # identity-path tile
        ],
        out_specs=pl.BlockSpec((b_imgs * cout, hw), lambda i: (i, 0)),
        compiler_params=pltpu.CompilerParams(
            dimension_semantics=("parallel",)),
        cost_estimate=pl.CostEstimate(
            flops=flops, transcendentals=0, bytes_accessed=bytes_accessed),
    )(x0_flat, wmat, x2_flat)

    return out_flat.reshape(n, cout, h, w)


if __name__ == "__main__":
    key = jax.random.PRNGKey(0)
    k0, k1, k2, kw_key = jax.random.split(key, 4)

    N, C, H, W = 2, 4, 16, 16          # small shapes consistent with the module
    x0 = jax.random.normal(k0, (N, C, H, W), jnp.float32)   # input to the DualConv2d dual
    x1 = jax.random.normal(k1, (N, C, H, W), jnp.float32)   # aligned with the `None` dual (unused)
    x2 = jax.random.normal(k2, (N, C, H, W), jnp.float32)   # input to the Identity dual
    conv_w = 0.1 * jax.random.normal(kw_key, (C, C, 3, 3), jnp.float32)  # nn.Conv2d(4,4,3) weight
    # note: nn.Conv2d also has a bias, but DualConv2d.forward ignores it (bias handled elsewhere).

    out = dual_dense_forward(x0, x1, x2, conv_w)
    out = jax.block_until_ready(out)

    # reference: F.conv2d(x0, W, stride=1, padding=1) + x2   (NCHW)
    ref = lax.conv_general_dilated(
        x0, conv_w, window_strides=(1, 1), padding=((1, 1), (1, 1)),
        dimension_numbers=("NCHW", "OIHW", "NCHW")) + x2
    assert out.shape == (N, C, H, W)
    assert jnp.allclose(out, ref, atol=1e-4, rtol=1e-4), float(jnp.max(jnp.abs(out - ref)))

    print("KERNEL_OK")
</pallas_src>

<mosaic_0001>
module attributes {stable_mosaic.version = 11 : i64} {
  func.func @kernel(%arg0: i32, %arg1: memref<8x256xf32, #tpu.memory_space<vmem>>, %arg2: memref<4x36xf32, #tpu.memory_space<vmem>>, %arg3: memref<8x256xf32, #tpu.memory_space<vmem>>, %arg4: memref<8x256xf32, #tpu.memory_space<vmem>>) attributes {dimension_semantics = [#tpu.dimension_semantics<parallel>], iteration_bounds = array<i64: 1>, scalar_prefetch = 0 : i64, scratch_operands = 0 : i64, tpu.core_type = #tpu.core_type<tc>, window_params = [{transform_indices = @transform_0, window_bounds = array<i64: 8, 256>}, {pipeline_mode = #tpu.pipeline_mode<synchronous>, transform_indices = @transform_1, window_bounds = array<i64: 4, 36>}, {transform_indices = @transform_2, window_bounds = array<i64: 8, 256>}, {transform_indices = @transform_3, window_bounds = array<i64: 8, 256>}]} {
    %c0 = arith.constant 0 : index
    %c0_0 = arith.constant 0 : index
    %0 = vector.load %arg1[%c0, %c0_0] : memref<8x256xf32, #tpu.memory_space<vmem>>, vector<8x256xf32>
    %1 = tpu.iota {dimensions = array<i32: 1>} : vector<8x256xi32>
    %c15_i32 = arith.constant 15 : i32
    %2 = vector.broadcast %c15_i32 : i32 to vector<8x256xi32>
    %3 = arith.andi %1, %2 : vector<8x256xi32>
    %c16_i32 = arith.constant 16 : i32
    %4 = vector.broadcast %c16_i32 : i32 to vector<8x256xi32>
    %5 = arith.cmpi sge, %1, %4 : vector<8x256xi32>
    %c240_i32 = arith.constant 240 : i32
    %6 = vector.broadcast %c240_i32 : i32 to vector<8x256xi32>
    %7 = arith.cmpi slt, %1, %6 : vector<8x256xi32>
    %c1_i32 = arith.constant 1 : i32
    %8 = vector.broadcast %c1_i32 : i32 to vector<8x256xi32>
    %9 = arith.cmpi sge, %3, %8 : vector<8x256xi32>
    %c15_i32_1 = arith.constant 15 : i32
    %10 = vector.broadcast %c15_i32_1 : i32 to vector<8x256xi32>
    %11 = arith.cmpi slt, %3, %10 : vector<8x256xi32>
    %c17_i32 = arith.constant 17 : i32
    %12 = tpu.dynamic_rotate %0 by %c17_i32 dim 1 : vector<8x256xf32>, i32 -> vector<8x256xf32>
    %13 = arith.andi %5, %9 : vector<8x256xi1>
    %cst = arith.constant 0.000000e+00 : f32
    %14 = vector.broadcast %cst : f32 to vector<8x256xf32>
    %15 = arith.select %13, %12, %14 : vector<8x256xi1>, vector<8x256xf32>
    %c16_i32_2 = arith.constant 16 : i32
    %16 = tpu.dynamic_rotate %0 by %c16_i32_2 dim 1 : vector<8x256xf32>, i32 -> vector<8x256xf32>
    %cst_3 = arith.constant 0.000000e+00 : f32
    %17 = vector.broadcast %cst_3 : f32 to vector<8x256xf32>
    %18 = arith.select %5, %16, %17 : vector<8x256xi1>, vector<8x256xf32>
    %c15_i32_4 = arith.constant 15 : i32
    %19 = tpu.dynamic_rotate %0 by %c15_i32_4 dim 1 : vector<8x256xf32>, i32 -> vector<8x256xf32>
    %20 = arith.andi %5, %11 : vector<8x256xi1>
    %cst_5 = arith.constant 0.000000e+00 : f32
    %21 = vector.broadcast %cst_5 : f32 to vector<8x256xf32>
    %22 = arith.select %20, %19, %21 : vector<8x256xi1>, vector<8x256xf32>
    %c1_i32_6 = arith.constant 1 : i32
    %23 = tpu.dynamic_rotate %0 by %c1_i32_6 dim 1 : vector<8x256xf32>, i32 -> vector<8x256xf32>
    %cst_7 = arith.constant 0.000000e+00 : f32
    %24 = vector.broadcast %cst_7 : f32 to vector<8x256xf32>
    %25 = arith.select %9, %23, %24 : vector<8x256xi1>, vector<8x256xf32>
    %c255_i32 = arith.constant 255 : i32
    %26 = tpu.dynamic_rotate %0 by %c255_i32 dim 1 : vector<8x256xf32>, i32 -> vector<8x256xf32>
    %cst_8 = arith.constant 0.000000e+00 : f32
    %27 = vector.broadcast %cst_8 : f32 to vector<8x256xf32>
    %28 = arith.select %11, %26, %27 : vector<8x256xi1>, vector<8x256xf32>
    %c241_i32 = arith.constant 241 : i32
    %29 = tpu.dynamic_rotate %0 by %c241_i32 dim 1 : vector<8x256xf32>, i32 -> vector<8x256xf32>
    %30 = arith.andi %7, %9 : vector<8x256xi1>
    %cst_9 = arith.constant 0.000000e+00 : f32
    %31 = vector.broadcast %cst_9 : f32 to vector<8x256xf32>
    %32 = arith.select %30, %29, %31 : vector<8x256xi1>, vector<8x256xf32>
    %c240_i32_10 = arith.constant 240 : i32
    %33 = tpu.dynamic_rotate %0 by %c240_i32_10 dim 1 : vector<8x256xf32>, i32 -> vector<8x256xf32>
    %cst_11 = arith.constant 0.000000e+00 : f32
    %34 = vector.broadcast %cst_11 : f32 to vector<8x256xf32>
    %35 = arith.select %7, %33, %34 : vector<8x256xi1>, vector<8x256xf32>
    %c239_i32 = arith.constant 239 : i32
    %36 = tpu.dynamic_rotate %0 by %c239_i32 dim 1 : vector<8x256xf32>, i32 -> vector<8x256xf32>
    %37 = arith.andi %7, %11 : vector<8x256xi1>
    %cst_12 = arith.constant 0.000000e+00 : f32
    %38 = vector.broadcast %cst_12 : f32 to vector<8x256xf32>
    %39 = arith.select %37, %36, %38 : vector<8x256xi1>, vector<8x256xf32>
    %40 = vector.extract_strided_slice %15 {offsets = [0, 0], sizes = [4, 256], strides = [1, 1]} : vector<8x256xf32> to vector<4x256xf32>
    %41 = vector.extract_strided_slice %18 {offsets = [0, 0], sizes = [4, 256], strides = [1, 1]} : vector<8x256xf32> to vector<4x256xf32>
    %42 = vector.extract_strided_slice %22 {offsets = [0, 0], sizes = [4, 256], strides = [1, 1]} : vector<8x256xf32> to vector<4x256xf32>
    %43 = vector.extract_strided_slice %25 {offsets = [0, 0], sizes = [4, 256], strides = [1, 1]} : vector<8x256xf32> to vector<4x256xf32>
    %44 = vector.extract_strided_slice %0 {offsets = [0, 0], sizes = [4, 256], strides = [1, 1]} : vector<8x256xf32> to vector<4x256xf32>
    %45 = vector.extract_strided_slice %28 {offsets = [0, 0], sizes = [4, 256], strides = [1, 1]} : vector<8x256xf32> to vector<4x256xf32>
    %46 = vector.extract_strided_slice %32 {offsets = [0, 0], sizes = [4, 256], strides = [1, 1]} : vector<8x256xf32> to vector<4x256xf32>
    %47 = vector.extract_strided_slice %35 {offsets = [0, 0], sizes = [4, 256], strides = [1, 1]} : vector<8x256xf32> to vector<4x256xf32>
    %48 = vector.extract_strided_slice %39 {offsets = [0, 0], sizes = [4, 256], strides = [1, 1]} : vector<8x256xf32> to vector<4x256xf32>
    %49 = tpu.concatenate %40, %41, %42, %43, %44, %45, %46, %47, %48 in 0 : vector<4x256xf32>, vector<4x256xf32>, vector<4x256xf32>, vector<4x256xf32>, vector<4x256xf32>, vector<4x256xf32>, vector<4x256xf32>, vector<4x256xf32>, vector<4x256xf32> -> vector<36x256xf32>
    %50 = vector.extract_strided_slice %15 {offsets = [4, 0], sizes = [4, 256], strides = [1, 1]} : vector<8x256xf32> to vector<4x256xf32>
    %51 = vector.extract_strided_slice %18 {offsets = [4, 0], sizes = [4, 256], strides = [1, 1]} : vector<8x256xf32> to vector<4x256xf32>
    %52 = vector.extract_strided_slice %22 {offsets = [4, 0], sizes = [4, 256], strides = [1, 1]} : vector<8x256xf32> to vector<4x256xf32>
    %53 = vector.extract_strided_slice %25 {offsets = [4, 0], sizes = [4, 256], strides = [1, 1]} : vector<8x256xf32> to vector<4x256xf32>
    %54 = vector.extract_strided_slice %0 {offsets = [4, 0], sizes = [4, 256], strides = [1, 1]} : vector<8x256xf32> to vector<4x256xf32>
    %55 = vector.extract_strided_slice %28 {offsets = [4, 0], sizes = [4, 256], strides = [1, 1]} : vector<8x256xf32> to vector<4x256xf32>
    %56 = vector.extract_strided_slice %32 {offsets = [4, 0], sizes = [4, 256], strides = [1, 1]} : vector<8x256xf32> to vector<4x256xf32>
    %57 = vector.extract_strided_slice %35 {offsets = [4, 0], sizes = [4, 256], strides = [1, 1]} : vector<8x256xf32> to vector<4x256xf32>
    %58 = vector.extract_strided_slice %39 {offsets = [4, 0], sizes = [4, 256], strides = [1, 1]} : vector<8x256xf32> to vector<4x256xf32>
    %59 = tpu.concatenate %50, %51, %52, %53, %54, %55, %56, %57, %58 in 0 : vector<4x256xf32>, vector<4x256xf32>, vector<4x256xf32>, vector<4x256xf32>, vector<4x256xf32>, vector<4x256xf32>, vector<4x256xf32>, vector<4x256xf32>, vector<4x256xf32> -> vector<36x256xf32>
    %60 = tpu.concatenate %49, %59 in 1 : vector<36x256xf32>, vector<36x256xf32> -> vector<36x512xf32>
    %c0_13 = arith.constant 0 : index
    %c0_14 = arith.constant 0 : index
    %61 = vector.load %arg2[%c0_13, %c0_14] : memref<4x36xf32, #tpu.memory_space<vmem>>, vector<4x36xf32>
    %cst_15 = arith.constant dense<0.000000e+00> : vector<4x512xf32>
    %62 = tpu.matmul %61, %60, %cst_15 {dimension_numbers = #tpu.dot_dimension_numbers<[1], [0], [0], [1], [0, 0, 1, 1], [], []>} : vector<4x36xf32>, vector<36x512xf32>, vector<4x512xf32> -> vector<4x512xf32>
    %63 = vector.extract_strided_slice %62 {offsets = [0, 0], sizes = [4, 256], strides = [1, 1]} : vector<4x512xf32> to vector<4x256xf32>
    %64 = vector.extract_strided_slice %62 {offsets = [0, 256], sizes = [4, 256], strides = [1, 1]} : vector<4x512xf32> to vector<4x256xf32>
    %65 = tpu.concatenate %63, %64 in 0 : vector<4x256xf32>, vector<4x256xf32> -> vector<8x256xf32>
    %c0_16 = arith.constant 0 : index
    %c0_17 = arith.constant 0 : index
    %66 = vector.load %arg3[%c0_16, %c0_17] : memref<8x256xf32, #tpu.memory_space<vmem>>, vector<8x256xf32>
    %67 = arith.addf %65, %66 : vector<8x256xf32>
    %c0_18 = arith.constant 0 : index
    %c0_19 = arith.constant 0 : index
    %68 = vector.load %arg4[%c0_18, %c0_19] : memref<8x256xf32, #tpu.memory_space<vmem>>, vector<8x256xf32>
    tpu.vector_store %arg4[%c0_18, %c0_19], %67 {strides = array<i32>} : memref<8x256xf32, #tpu.memory_space<vmem>>, vector<8x256xf32>,
    return
  }
  func.func @transform_0(%arg0: i32) -> (i32, i32) {
    %c0_i32 = arith.constant 0 : i32
    %c0_i32_0 = arith.constant 0 : i32
    return %arg0, %c0_i32 : i32, i32
  }
  func.func @transform_1(%arg0: i32) -> (i32, i32) {
    %c0_i32 = arith.constant 0 : i32
    %c0_i32_0 = arith.constant 0 : i32
    %c0_i32_1 = arith.constant 0 : i32
    return %c0_i32, %c0_i32_0 : i32, i32
  }
  func.func @transform_2(%arg0: i32) -> (i32, i32) {
    %c0_i32 = arith.constant 0 : i32
    %c0_i32_0 = arith.constant 0 : i32
    return %arg0, %c0_i32 : i32, i32
  }
  func.func @transform_3(%arg0: i32) -> (i32, i32) {
    %c0_i32 = arith.constant 0 : i32
    %c0_i32_0 = arith.constant 0 : i32
    return %arg0, %c0_i32 : i32, i32
  }
}

</mosaic_0001>

<bundles_post_ra>
// kernel: tpu_custom_call.1
= control target key start
LH: loop header
LB: loop body
LE: loop exit
PB: predicated region body
PF: predicated region fallthrough
CT: control target
= control target key end

     0   :  { %8 = vsyncpa [#allocation3], 0  ;;  %s789_s0 = inlined_call_operand.hbm [shape: f32[8,256], index: 0, kind: input, shape index: {}]   ;;  %s790_s1 = inlined_call_operand.hbm [shape: f32[4,36], index: 1, kind: input, shape index: {}]   ;;  %s791_s2 = inlined_call_operand.hbm [shape: f32[8,256], index: 2, kind: input, shape index: {}]   ;;  %s792_s3 = inlined_call_operand.hbm [shape: f32[8,256], index: 3, kind: output, shape index: {}]  }
   0x1   :  { %9 = vsyncpa [#allocation6], 0 }
   0x2   :  { %10 = vsyncpa [#allocation4], 0  ;;  %s563_s12 = smov [#allocation5]   ;;  %s564_s14 = smov [#allocation2]  }
   0x3   :  { %s27_s13 = sshll.u32 %s563_s12, 4  ;;  %s17_s15 = sshll.u32 %s564_s14, 4  ;;  %s28_s13 = int_to_ptr.vmem [resolvable:$true] %s27_s13  ;;  %s18_s15 = int_to_ptr.vmem [resolvable:$true] %s17_s15 }
   0x4   :  { %s469_s18 = scalar_lea.hbm %s790_s1, 64 }
   0x5   :  { %p470_p0 = scmp.ne.s32.totalorder %s790_s1, %s469_s18  ;;  %p473_p1 = scmp.lt.u32.totalorder %s469_s18, %s790_s1 }
   0x7   :  { %p475_p2 = pnand %p473_p1, %p470_p0 }
   0x9   :  { %478 = shalt.err (!%p475_p2)
}
   0xa   :  { %s479_s23 = scalar_lea.vmem %s28_s13, 64  ;;  %p484_p4 = scmp.lt.s32.totalorder %s28_s13, %s28_s13 }
   0xb   :  { %p480_p3 = scmp.ne.s32.totalorder %s28_s13, %s479_s23  ;;  %p485_p5 = scmp.lt.s32.totalorder %s479_s23, %s479_s23 }
   0xd   :  { %p486_p6 = por %p485_p5, %p484_p4 }
   0xf   :  { %p487_p7 = pnand %p486_p6, %p480_p3 }
  0x11   :  { %490 = shalt.err (!%p487_p7)
}
  0x12   :  { %30 = dma.hbm_to_vmem [thread:$0]  %s790_s1, 64, %s28_s13, [#allocation6]  }
  0x13   :  { %s491_s28 = scalar_lea.hbm %s789_s0, 256 }
  0x14   :  { %p492_p8 = scmp.ne.s32.totalorder %s789_s0, %s491_s28  ;;  %p495_p9 = scmp.lt.u32.totalorder %s491_s28, %s789_s0 }
  0x16   :  { %p497_p10 = pnand %p495_p9, %p492_p8 }
  0x18   :  { %500 = shalt.err (!%p497_p10)
}
  0x19   :  { %s501_s6 = scalar_lea.vmem %s18_s15, 256  ;;  %p506_p12 = scmp.lt.s32.totalorder %s18_s15, %s18_s15 }
  0x1a   :  { %p502_p11 = scmp.ne.s32.totalorder %s18_s15, %s501_s6  ;;  %p507_p13 = scmp.lt.s32.totalorder %s501_s6, %s501_s6 }
  0x1c   :  { %p508_p0 = por %p507_p13, %p506_p12 }
  0x1e   :  { %p509_p1 = pnand %p508_p0, %p502_p11 }
  0x20   :  { %512 = shalt.err (!%p509_p1)
}
  0x21   :  { %20 = dma.hbm_to_vmem [thread:$0]  %s789_s0, 256, %s18_s15, [#allocation3]  }
  0x22   :  { %s565_s8 = smov [#allocation7]   ;;  %s513_s12 = scalar_lea.hbm %s791_s2, 256 }
  0x23   :  { %s37_s9 = sshll.u32 %s565_s8, 4  ;;  %p514_p2 = scmp.ne.s32.totalorder %s791_s2, %s513_s12  ;;  %s38_s9 = int_to_ptr.vmem [resolvable:$true] %s37_s9 }
  0x24   :  { %p517_p3 = scmp.lt.u32.totalorder %s513_s12, %s791_s2 }
  0x26   :  { %p519_p4 = pnand %p517_p3, %p514_p2 }
  0x28   :  { %522 = shalt.err (!%p519_p4)
}
  0x29   :  { %s523_s18 = scalar_lea.vmem %s38_s9, 256  ;;  %p528_p6 = scmp.lt.s32.totalorder %s38_s9, %s38_s9 }
  0x2a   :  { %p524_p5 = scmp.ne.s32.totalorder %s38_s9, %s523_s18  ;;  %p529_p7 = scmp.lt.s32.totalorder %s523_s18, %s523_s18 }
  0x2c   :  { %p530_p8 = por %p529_p7, %p528_p6 }
  0x2e   :  { %p531_p9 = pnand %p530_p8, %p524_p5 }
  0x30   :  { %534 = shalt.err (!%p531_p9)
}
  0x31   :  { %40 = dma.hbm_to_vmem [thread:$0]  %s791_s2, 256, %s38_s9, [#allocation6]  }
  0x32   :  { %557 = dma.done.wait [#allocation3], 256  }
  0x33   :  { %558 = vsyncadd [#allocation3], 4294967040 }
  0x34   :  { %559 = dma.done.wait [#allocation6], 320  }
  0x35   :  { %560 = vsyncadd [#allocation6], 4294966976  ;;  %v632_v0 = vld [vmem:[#allocation2] sm:$0xff]  ;;  %v634_v1 = vld [vmem:[#allocation2 + $0x8] sm:$0xff]  ;;  %s566_s19 = smov 1   ;;  %s567_s20 = smov 17   ;;  %v52_v4 = vlaneseq }
  0x36   :  { %v444_v2 = vpack.i.bf16 %v634_v1, %v632_v0  ;;  %s568_s21 = smov 16   ;;  %s569_s22 = smov 15   ;;  %v574_v3 = vmov 0.0   ;;  %vm169_vm4 = vcmask 1043456   ;;  %v193_v19 = vrot.slane %v634_v1, 4 }
  0x37   :  { %s570_s2 = smov 113   ;;  %s571_s23 = smov 127   ;;  %362 = vmatprep.mubr.f32.mxu1 %v574_v3  ;;  %291 = vmatprep.mubr.f32.mxu0 %v574_v3  ;;  %v640_v5 = vand.u32 127, %v52_v4  ;;  %v192_v29 = vrot.slane %v632_v0, 4 }
  0x38   :  { %445 = vrot.lane.b32.xlu1 %v444_v2, %s566_s19  ;;  %435 = vrot.lane.b32.xlu0 %v444_v2, %s567_s20  ;;  %s572_s24 = smov 112   ;;  %s573_s25 = smov 111  }
  0x39   :  { %v643_v6 = vadd.s32 128, %v640_v5  ;;  %v55_v7 = vand.u32 15, %v640_v5  ;;  %vm100_vm0 = vcmp.lt.s32.totalorder %v640_v5, 1  ;;  %vm57_vm1 = vcmp.ge.s32.totalorder %v640_v5, 16  ;;  %s575_s26 = smov [#allocation8]  }
  0x3a   :  { %vm80_vm2 = vcmp.lt.s32.totalorder %v640_v5, 16  ;;  %vm69_vm3 = vcmp.lt.s32.totalorder %v640_v5, 17  ;;  %vm118_vm6 = vcmp.lt.s32.totalorder %v640_v5, 113  ;;  %vm89_vm8 = vcmp.lt.s32.totalorder %v640_v5, 15  ;;  %s389_s27 = sshll.u32 %s575_s26, 4  ;;  %s390_s27 = int_to_ptr.vmem [resolvable:$true] %s389_s27 }
  0x3b   :  { %v56_v8 = vand.u32 15, %v643_v6  ;;  %vm651_vm5 = vcmp.ge.s32.totalorder %v55_v7, 1  ;;  %vm661_vm9 = vcmp.lt.s32.totalorder %v55_v7, 15  ;;  %vm109_vm10 = vcmp.lt.s32.totalorder %v640_v5, 127  ;;  %s535_s28 = scalar_lea.vmem %s390_s27, 256  ;;  %p540_p11 = scmp.lt.s32.totalorder %s390_s27, %s390_s27 }
  0x3c   :  { %450 = vrot.lane.b32.xlu1 %v444_v2, %s568_s21  ;;  %440 = vrot.lane.b32.xlu0 %v444_v2, %s569_s22  ;;  %vm60_vm12 = vcmp.lt.s32.totalorder %v643_v6, 240  ;;  %vm72_vm13 = vmand %vm57_vm1, %vm651_vm5  ;;  %vm129_vm14 = vcmp.lt.s32.totalorder %v640_v5, 112  ;;  %p536_p10 = scmp.ne.s32.totalorder %s390_s27, %s535_s28  ;;  %p541_p12 = scmp.lt.s32.totalorder %s535_s28, %s535_s28 }
  0x3d   :  { %vm656_vm7 = vcmp.ge.s32.totalorder %v56_v8, 1  ;;  %vm666_vm11 = vcmp.lt.s32.totalorder %v56_v8, 15  ;;  %vm92_vm15 = vmand %vm57_vm1, %vm661_vm9 }
  0x3e   :  { %p542_p13 = por %p541_p12, %p540_p11 }
  0x40   :  { %455 = vrot.lane.b32.xlu0 %v444_v2, %s570_s2  ;;  %460 = vrot.lane.b32.xlu1 %v444_v2, %s571_s23  ;;  %p543_p0 = pnand %p542_p13, %p536_p10 }
  0x44   :  { %465 = vrot.lane.b32.xlu0 %v444_v2, %s572_s24  ;;  %134 = vrot.lane.b32.xlu1 %v632_v0, %s573_s25 }
  0x48   :  { %136 = vrot.lane.b32.xlu0 %v634_v1, %s573_s25 }
  0xaa   :  { %v446_v10 = vpop.permute.xlu1 %445  ;;  %v436_v11 = vpop.permute.xlu0 %435 }
  0xab   :  { %v448_v14 = vunpack.i.h.bf16 %v446_v10  ;;  %v447_v15 = vunpack.i.l.bf16 %v446_v10  ;;  %v438_v16 = vunpack.i.h.bf16 %v436_v11  ;;  %v437_v17 = vunpack.i.l.bf16 %v436_v11 }
  0xad   :  { %v101_v20 = vsel %vm100_vm0, %v447_v15, %v448_v14  ;;  %v102_v21 = vsel %vm100_vm0, %v448_v14, %v447_v15  ;;  %v70_v22 = vsel %vm69_vm3, %v437_v17, %v438_v16  ;;  %v71_v23 = vsel %vm69_vm3, %v438_v16, %v437_v17 }
  0xae   :  { %v103_v24 = vsel %vm651_vm5, %v102_v21, 0.0  ;;  %v451_v25 = vpop.permute.xlu1 %450  ;;  %v441_v26 = vpop.permute.xlu0 %440  ;;  %v75_v27 = vsel %vm656_vm7, %v70_v22, 0.0  ;;  %v104_v28 = vsel %vm656_vm7, %v101_v20, 0.0  ;;  %v74_v36 = vsel %vm72_vm13, %v71_v23, 0.0 }
  0xaf   :  { %v453_v30 = vunpack.i.h.bf16 %v451_v25  ;;  %v452_v31 = vunpack.i.l.bf16 %v451_v25  ;;  %v443_v32 = vunpack.i.h.bf16 %v441_v26  ;;  %v442_v33 = vunpack.i.l.bf16 %v441_v26 }
  0xb0   :  { %v154_v34 = vrot.slane %v104_v28, 4  ;;  %v181_v35 = vrot.slane %v75_v27, 4  ;;  %v153_v37 = vrot.slane %v103_v24, 4  ;;  %vm138_vm0 = vcmp.lt.s32.totalorder %v640_v5, 111 }
  0xb1   :  { %v81_v38 = vsel %vm80_vm2, %v452_v31, %v453_v30  ;;  %v82_v39 = vsel %vm80_vm2, %v453_v30, %v452_v31  ;;  %v90_v40 = vsel %vm89_vm8, %v442_v33, %v443_v32  ;;  %v91_v41 = vsel %vm89_vm8, %v443_v32, %v442_v33  ;;  %vm142_vm2 = vmand %vm60_vm12, %vm666_vm11 }
  0xb2   :  { %v83_v42 = vsel %vm57_vm1, %v82_v39, 0.0  ;;  %v456_v43 = vpop.permute.xlu0 %455  ;;  %v461_v44 = vpop.permute.xlu1 %460  ;;  %v95_v45 = vsel %vm666_vm11, %v90_v40, 0.0  ;;  %v148_v46 = vrot.slane %v81_v38, 4  ;;  %v94_v47 = vsel %vm92_vm15, %v91_v41, 0.0  ;;  %vm727_vm1 = vmand %vm60_vm12, %vm656_vm7 }
  0xb3   :  { %v458_v48 = vunpack.i.h.bf16 %v456_v43  ;;  %v457_v49 = vunpack.i.l.bf16 %v456_v43  ;;  %v463_v50 = vunpack.i.h.bf16 %v461_v44  ;;  %v462_v51 = vunpack.i.l.bf16 %v461_v44 }
  0xb4   :  { %v171_v52 = vsel %vm169_vm4, %v75_v27, %v148_v46  ;;  %v173_v53 = vsel %vm169_vm4, %v95_v45, %v154_v34  ;;  %v187_v54 = vrot.slane %v95_v45, 4  ;;  %v147_v55 = vrot.slane %v83_v42, 4 }
  0xb5   :  { %v119_v56 = vsel %vm118_vm6, %v457_v49, %v458_v48  ;;  %v120_v57 = vsel %vm118_vm6, %v458_v48, %v457_v49  ;;  %v110_v58 = vsel %vm109_vm10, %v462_v51, %v463_v50  ;;  %v180_v59 = vrot.slane %v74_v36, 4 }
  0xb6   :  { %v123_v60 = vsel %vm651_vm5, %v119_v56, 0.0  ;;  %v111_v61 = vsel %vm109_vm10, %v463_v50, %v462_v51  ;;  %v466_v62 = vpop.permute.xlu0 %465  ;;  %v405_v63 = vpack.c.bf16 %v173_v53, %v171_v52  ;;  %v170_v2 = vsel %vm169_vm4, %v74_v36, %v147_v55  ;;  %v135_v16 = vpop.permute.xlu1 %134  ;;  %v377_v50 = vld [vmem:[#allocation7] sm:$0xff]  ;;  %v378_v53 = vld [vmem:[#allocation7 + $0x8] sm:$0xff] }
  0xb7   :  { %v468_v3 = vunpack.i.h.bf16 %v466_v62  ;;  %v467_v4 = vunpack.i.l.bf16 %v466_v62  ;;  %v172_v7 = vsel %vm169_vm4, %v94_v47, %v153_v37  ;;  %v186_v8 = vrot.slane %v94_v47, 4 }
  0xb8   :  { %406 = vmatprep.subr.bf16.mxu0 %v405_v63  ;;  %v407_v9 = vpack.c.bf16 %v172_v7, %v170_v2  ;;  %v207_v11 = vsel %vm169_vm4, %v181_v35, %v81_v38  ;;  %v209_v14 = vsel %vm169_vm4, %v187_v54, %v104_v28  ;;  %v206_v15 = vsel %vm169_vm4, %v180_v59, %v83_v42 }
  0xb9   :  { %v130_v17 = vsel %vm129_vm14, %v467_v4, %v468_v3  ;;  %v131_v12 = vsel %vm129_vm14, %v468_v3, %v467_v4  ;;  %v413_v20 = vpack.c.bf16 %v209_v14, %v207_v11  ;;  %v208_v21 = vsel %vm169_vm4, %v186_v8, %v103_v24 }
  0xba   :  { %v198_v22 = vrot.slane %v123_v60, 4  ;;  %408 = vmatpush1.bf16.msra.mxu0 %v407_v9  ;;  %v415_v23 = vpack.c.bf16 %v208_v21, %v206_v15  ;;  %v137_v25 = vpop.permute.xlu0 %136  ;;  %v124_v26 = vsel %vm727_vm1, %v120_v57, 0.0  ;;  %v113_v27 = vsel %vm666_vm11, %v111_v61, 0.0 }
  0xbb   :  { %414 = vmatprep.subr.bf16.mxu1 %v413_v20  ;;  %v139_v28 = vsel %vm138_vm0, %v135_v16, %v137_v25  ;;  %v140_v24 = vsel %vm138_vm0, %v137_v25, %v135_v16  ;;  %v133_v30 = vsel %vm60_vm12, %v131_v12, 0.0  ;;  %v160_v31 = vrot.slane %v113_v27, 4 }
  0xbc   :  { %v165_v32 = vrot.slane %v130_v17, 4  ;;  %416 = vmatpush1.bf16.msra.mxu1 %v415_v23  ;;  %v144_v33 = vsel %vm142_vm2, %v140_v24, 0.0  ;;  %v166_v34 = vrot.slane %v133_v30, 4  ;;  %v199_v35 = vrot.slane %v124_v26, 4 }
  0xbd   :  { %v143_v18 = vsel %vm661_vm9, %v139_v28, 0.0  ;;  %v211_v36 = vsel %vm169_vm4, %v193_v19, %v113_v27  ;;  %v112_v5 = vsel %vm661_vm9, %v110_v58, 0.0  ;;  %v212_v39 = vsel %vm169_vm4, %v198_v22, %v130_v17 }
  0xbe   :  { %v213_v37 = vsel %vm169_vm4, %v199_v35, %v133_v30  ;;  %v159_v6 = vrot.slane %v112_v5, 4  ;;  %v210_v38 = vsel %vm169_vm4, %v192_v29, %v112_v5  ;;  %v205_v40 = vrot.slane %v144_v33, 4 }
  0xbf   :  { %v417_v41 = vpack.c.bf16 %v213_v37, %v211_v36  ;;  %v175_v42 = vsel %vm169_vm4, %v634_v1, %v160_v31  ;;  %v177_v43 = vsel %vm169_vm4, %v124_v26, %v166_v34  ;;  %v419_v19 = vpack.c.bf16 %v212_v39, %v210_v38  ;;  %v214_v1 = vld [vmem:[#allocation5] sm:$0xf] }
  0xc0   :  { %v409_v44 = vpack.c.bf16 %v177_v43, %v175_v42  ;;  %v174_v13 = vsel %vm169_vm4, %v632_v0, %v159_v6  ;;  %v176_v45 = vsel %vm169_vm4, %v123_v60, %v165_v32  ;;  %v204_v47 = vrot.slane %v143_v18, 4 }
  0xc1   :  { %418 = vmatprep.subr.bf16.mxu1 %v417_v41  ;;  %v411_v46 = vpack.c.bf16 %v176_v45, %v174_v13  ;;  %vm215_vm3 = vcmask 293888  }
  0xc2   :  { %420 = vmatpush1.bf16.msra.mxu1 %v419_v19  ;;  %410 = vmatprep.subr.bf16.mxu0 %v409_v44 }
  0xc3   :  { %412 = vmatpush1.bf16.msra.mxu0 %v411_v46  ;;  %402 = vmatprep.subr.msk.mxu1 %vm169_vm4, %v205_v40 }
  0xc4   :  { %399 = vmatprep.subr.msk.mxu0 %vm169_vm4, %v144_v33 }
  0xc6   :  { %403 = vmatpush1.msk.msra.mxu1 %vm169_vm4, %v204_v47 }
  0xc7   :  { %404 = vmatmul.mubr.msk.f32.vlgmr.msra.gmra.mrb[0].mxu1 %vm215_vm3, %v214_v1  ;;  %400 = vmatpush1.msk.msra.mxu0 %vm169_vm4, %v143_v18 }
  0xc8   :  { %401 = vmatmul.mubr.msk.f32.vlgmr.msra.gmra.mrb[0].mxu0 %vm215_vm3, %v214_v1 }
 0x19a   :  { %v364_v0 = vpop.f32.mrb[0].mxu1 }
 0x19b   :  { %v371_v29 = vrot.slane %v364_v0, 4  ;;  %v366_v48 = vpop.f32.mrb[1].mxu1  ;;  %v293_v49 = vpop.f32.mrb[0].mxu0 }
 0x19c   :  { %v372_v51 = vrot.slane %v366_v48, 4  ;;  %v295_v52 = vpop.f32.mrb[1].mxu0 }
 0x19d   :  { %v375_v54 = vsel %vm169_vm4, %v293_v49, %v371_v29 }
 0x19e   :  { %v379_v55 = vadd.f32 %v377_v50, %v375_v54  ;;  %v376_v56 = vsel %vm169_vm4, %v295_v52, %v372_v51 }
 0x19f   :  { %v380_v57 = vadd.f32 %v378_v53, %v376_v56 }
 0x1a0   :  { %381 = vst [vmem:[#allocation8] sm:$0xff] %v379_v55 }
 0x1a1   :  { %382 = vst [vmem:[#allocation8 + $0x8] sm:$0xff] %v380_v57 }
 0x1a2   :  { %546 = shalt.err (!%p543_p0)
}
 0x1a3   :  { %s547_s4 = scalar_lea.hbm %s792_s3, 256 }
 0x1a4   :  { %p548_p1 = scmp.ne.s32.totalorder %s792_s3, %s547_s4  ;;  %p551_p2 = scmp.lt.u32.totalorder %s547_s4, %s792_s3 }
 0x1a6   :  { %p553_p3 = pnand %p551_p2, %p548_p1 }
 0x1a8   :  { %556 = shalt.err (!%p553_p3)
}
 0x1a9   :  { %392 = dma.vmem_to_hbm [thread:$0]  %s390_s27, 256, %s792_s3, [#allocation4]  }
 0x1aa   :  { %561 = dma.done.wait [#allocation4], 256  }
 0x1ab   :  { %562 = vsyncadd [#allocation4], 4294967040 }
 0x1ac   :  { %396 = vsyncpa [#allocation3], 1 }
 0x1ad   :  { %397 = vsyncpa [#allocation6], 1 }
 0x1ae   :  { %398 = vsyncpa [#allocation4], 1 }

</bundles_post_ra>
